<compile_context>
chip_gen: v5e
topology: v5e:2x2
jax: 0.10.0
libtpu: 0.0.40
codegen_flags: <defaults>
</compile_context>

<pallas_src>
import jax
import jax.numpy as jnp
from jax.experimental import pallas as pl
from jax.experimental.pallas import tpu as pltpu

C_IN, C_OUT, KH, KW = 4, 1, 3, 3


def conv3x3_nchw_kernel(x_ref, w_ref, b_ref, o_ref):
    # x_ref: (bt, C_IN, H, W)    VMEM -- W on lanes, H on sublanes
    # w_ref: (C_IN*KH*KW,)       SMEM -- flattened OIHW weights (C_OUT == 1)
    # b_ref: (C_OUT,)            SMEM
    # o_ref: (bt, C_OUT, rc, Wo) VMEM -- one chunk of output rows
    bt = x_ref.shape[0]
    rc, Wo = o_ref.shape[2], o_ref.shape[3]

    # First output row produced by this grid step (second grid axis).
    row0 = pl.program_id(1) * rc

    # Hoist the 36 SMEM weight reads and the bias once per kernel body.
    ws = [w_ref[i] for i in range(C_IN * KH * KW)]
    bias = b_ref[0]

    for b in range(bt):
        parts = []
        for c in range(C_IN):
            acc = None
            for kh in range(KH):
                # One lane-aligned, sublane-offset VMEM load per (c, kh).
                rows = x_ref[b, c, pl.ds(row0 + kh, rc), :]        # (rc, W)
                for kw in range(KW):
                    # kw=1,2 are in-register lane shifts (XLU), not VMEM loads.
                    tap = rows[:, kw:kw + Wo]                      # (rc, Wo)
                    term = tap * ws[(c * KH + kh) * KW + kw]
                    acc = term if acc is None else acc + term
            parts.append(acc)
        # 4 independent accumulation chains -> tree sum, single bias add,
        # single store per chunk (accumulators never touch VMEM).
        out = (parts[0] + parts[1]) + (parts[2] + parts[3]) + bias
        o_ref[b, 0, :, :] = out


def _pick_bt(B, H, W, vmem_budget=8 * 1024 * 1024):
    """Images per grid step: a divisor of B that keeps >= 2 grid steps and a
    double-buffered input block inside a conservative VMEM budget."""
    for d in (8, 4, 2):
        if B % d == 0 and B // d >= 2 and 2 * d * C_IN * H * W * 4 <= vmem_budget:
            return d
    return 1


def _pick_rc(Ho, W):
    """Output rows per grid step: must be divisible by 8 and divide Ho, or
    equal Ho (BlockSpec constraint), and small enough that the 4 partial
    accumulators stay vreg-resident (a few vregs each)."""
    lane_groups = -(-W // 128)                 # ceil(W / 128)
    rc_cap = 8 * max(1, 4 // lane_groups)      # <= ~4 vregs per partial acc
    if Ho <= rc_cap:
        return Ho
    for rc in range(rc_cap, 0, -8):
        if Ho % rc == 0:
            return rc
    return Ho  # no clean split; full height (still correct, may spill for huge H)


def conv2d_4to1_3x3(x, weight, bias):
    """x: (B, 4, H, W) f32; weight: (1, 4, 3, 3); bias: (1,).
    Returns (B, 1, H-2, W-2) f32 (VALID padding, stride 1)."""
    B, C, H, W = x.shape
    assert C == C_IN and H >= KH and W >= KW
    Ho, Wo = H - KH + 1, W - KW + 1

    bt = _pick_bt(B, H, W)
    rc = _pick_rc(Ho, W)
    grid = (B // bt, Ho // rc)

    w_flat = weight.astype(jnp.float32).reshape(C_OUT * C_IN * KH * KW)
    b_vec = bias.astype(jnp.float32).reshape(C_OUT)

    # Explicit scoped-VMEM limit derived from the actual block sizes
    # (v7x only has 64 MiB physical VMEM).
    in_block = bt * C_IN * H * W * 4
    out_block = bt * C_OUT * rc * Wo * 4
    vmem_limit = int(min(64 << 20, max(8 << 20, 6 * (in_block + out_block))))

    return pl.pallas_call(
        conv3x3_nchw_kernel,
        out_shape=jax.ShapeDtypeStruct((B, C_OUT, Ho, Wo), jnp.float32),
        grid=grid,
        in_specs=[
            # Input block index ignores the row-chunk axis -> not re-DMA'd.
            pl.BlockSpec((bt, C_IN, H, W), lambda b, r: (b, 0, 0, 0)),
            pl.BlockSpec(memory_space=pltpu.MemorySpace.SMEM),
            pl.BlockSpec(memory_space=pltpu.MemorySpace.SMEM),
        ],
        out_specs=pl.BlockSpec((bt, C_OUT, rc, Wo), lambda b, r: (b, 0, r, 0)),
        compiler_params=pltpu.CompilerParams(
            dimension_semantics=("parallel", "parallel"),
            vmem_limit_bytes=vmem_limit,
        ),
    )(x.astype(jnp.float32), w_flat, b_vec)


if __name__ == "__main__":
    key = jax.random.PRNGKey(0)
    kx, kw_, kb, kx2 = jax.random.split(key, 4)

    # Deterministic PyTorch-style Conv2d init: U(-1/sqrt(fan_in), +1/sqrt(fan_in)).
    fan_in = C_IN * KH * KW
    bound = 1.0 / (fan_in ** 0.5)
    weight = jax.random.uniform(kw_, (C_OUT, C_IN, KH, KW), jnp.float32, -bound, bound)
    bias = jax.random.uniform(kb, (C_OUT,), jnp.float32, -bound, bound)

    def reference(xx):
        return jax.lax.conv_general_dilated(
            xx, weight, window_strides=(1, 1), padding="VALID",
            dimension_numbers=("NCHW", "OIHW", "NCHW"),
        ) + bias.reshape(1, C_OUT, 1, 1)

    # Small test shape (batch=2, channels=4, spatial=16) -> grid (2, 1).
    x = jax.random.normal(kx, (2, C_IN, 16, 16), dtype=jnp.float32)
    out = jax.block_until_ready(conv2d_4to1_3x3(x, weight, bias))
    assert out.shape == (2, C_OUT, 14, 14)
    assert jnp.allclose(out, reference(x), atol=1e-4, rtol=1e-4)

    # The module's canonical input shape (1, 4, 32, 32).
    x2 = jax.random.normal(kx2, (1, C_IN, 32, 32), dtype=jnp.float32)
    out2 = jax.block_until_ready(conv2d_4to1_3x3(x2, weight, bias))
    assert out2.shape == (1, C_OUT, 30, 30)
    assert jnp.allclose(out2, reference(x2), atol=1e-4, rtol=1e-4)

    print("KERNEL_OK")
</pallas_src>

<mosaic_0001>
module attributes {stable_mosaic.version = 11 : i64} {
  func.func @conv3x3_nchw_kernel(%arg0: i32, %arg1: i32, %arg2: memref<1x4x16x16xf32, #tpu.memory_space<vmem>>, %arg3: memref<36xf32, #tpu.memory_space<smem>>, %arg4: memref<1xf32, #tpu.memory_space<smem>>, %arg5: memref<1x1x14x14xf32, #tpu.memory_space<vmem>>) attributes {dimension_semantics = [#tpu.dimension_semantics<parallel>, #tpu.dimension_semantics<parallel>], iteration_bounds = array<i64: 2, 1>, scalar_prefetch = 0 : i64, scratch_operands = 0 : i64, tpu.core_type = #tpu.core_type<tc>, window_params = [{transform_indices = @transform_0, window_bounds = array<i64: 1, 4, 16, 16>}, {transform_indices = @transform_1, window_bounds = array<i64: 36>}, {transform_indices = @transform_2, window_bounds = array<i64: 1>}, {transform_indices = @transform_3, window_bounds = array<i64: 1, 1, 14, 14>}]} {
    %c14_i32 = arith.constant 14 : i32
    %0 = arith.muli %arg1, %c14_i32 : i32
    %c0 = arith.constant 0 : index
    %1 = memref.load %arg3[%c0] : memref<36xf32, #tpu.memory_space<smem>>
    %c1 = arith.constant 1 : index
    %2 = memref.load %arg3[%c1] : memref<36xf32, #tpu.memory_space<smem>>
    %c2 = arith.constant 2 : index
    %3 = memref.load %arg3[%c2] : memref<36xf32, #tpu.memory_space<smem>>
    %c3 = arith.constant 3 : index
    %4 = memref.load %arg3[%c3] : memref<36xf32, #tpu.memory_space<smem>>
    %c4 = arith.constant 4 : index
    %5 = memref.load %arg3[%c4] : memref<36xf32, #tpu.memory_space<smem>>
    %c5 = arith.constant 5 : index
    %6 = memref.load %arg3[%c5] : memref<36xf32, #tpu.memory_space<smem>>
    %c6 = arith.constant 6 : index
    %7 = memref.load %arg3[%c6] : memref<36xf32, #tpu.memory_space<smem>>
    %c7 = arith.constant 7 : index
    %8 = memref.load %arg3[%c7] : memref<36xf32, #tpu.memory_space<smem>>
    %c8 = arith.constant 8 : index
    %9 = memref.load %arg3[%c8] : memref<36xf32, #tpu.memory_space<smem>>
    %c9 = arith.constant 9 : index
    %10 = memref.load %arg3[%c9] : memref<36xf32, #tpu.memory_space<smem>>
    %c10 = arith.constant 10 : index
    %11 = memref.load %arg3[%c10] : memref<36xf32, #tpu.memory_space<smem>>
    %c11 = arith.constant 11 : index
    %12 = memref.load %arg3[%c11] : memref<36xf32, #tpu.memory_space<smem>>
    %c12 = arith.constant 12 : index
    %13 = memref.load %arg3[%c12] : memref<36xf32, #tpu.memory_space<smem>>
    %c13 = arith.constant 13 : index
    %14 = memref.load %arg3[%c13] : memref<36xf32, #tpu.memory_space<smem>>
    %c14 = arith.constant 14 : index
    %15 = memref.load %arg3[%c14] : memref<36xf32, #tpu.memory_space<smem>>
    %c15 = arith.constant 15 : index
    %16 = memref.load %arg3[%c15] : memref<36xf32, #tpu.memory_space<smem>>
    %c16 = arith.constant 16 : index
    %17 = memref.load %arg3[%c16] : memref<36xf32, #tpu.memory_space<smem>>
    %c17 = arith.constant 17 : index
    %18 = memref.load %arg3[%c17] : memref<36xf32, #tpu.memory_space<smem>>
    %c18 = arith.constant 18 : index
    %19 = memref.load %arg3[%c18] : memref<36xf32, #tpu.memory_space<smem>>
    %c19 = arith.constant 19 : index
    %20 = memref.load %arg3[%c19] : memref<36xf32, #tpu.memory_space<smem>>
    %c20 = arith.constant 20 : index
    %21 = memref.load %arg3[%c20] : memref<36xf32, #tpu.memory_space<smem>>
    %c21 = arith.constant 21 : index
    %22 = memref.load %arg3[%c21] : memref<36xf32, #tpu.memory_space<smem>>
    %c22 = arith.constant 22 : index
    %23 = memref.load %arg3[%c22] : memref<36xf32, #tpu.memory_space<smem>>
    %c23 = arith.constant 23 : index
    %24 = memref.load %arg3[%c23] : memref<36xf32, #tpu.memory_space<smem>>
    %c24 = arith.constant 24 : index
    %25 = memref.load %arg3[%c24] : memref<36xf32, #tpu.memory_space<smem>>
    %c25 = arith.constant 25 : index
    %26 = memref.load %arg3[%c25] : memref<36xf32, #tpu.memory_space<smem>>
    %c26 = arith.constant 26 : index
    %27 = memref.load %arg3[%c26] : memref<36xf32, #tpu.memory_space<smem>>
    %c27 = arith.constant 27 : index
    %28 = memref.load %arg3[%c27] : memref<36xf32, #tpu.memory_space<smem>>
    %c28 = arith.constant 28 : index
    %29 = memref.load %arg3[%c28] : memref<36xf32, #tpu.memory_space<smem>>
    %c29 = arith.constant 29 : index
    %30 = memref.load %arg3[%c29] : memref<36xf32, #tpu.memory_space<smem>>
    %c30 = arith.constant 30 : index
    %31 = memref.load %arg3[%c30] : memref<36xf32, #tpu.memory_space<smem>>
    %c31 = arith.constant 31 : index
    %32 = memref.load %arg3[%c31] : memref<36xf32, #tpu.memory_space<smem>>
    %c32 = arith.constant 32 : index
    %33 = memref.load %arg3[%c32] : memref<36xf32, #tpu.memory_space<smem>>
    %c33 = arith.constant 33 : index
    %34 = memref.load %arg3[%c33] : memref<36xf32, #tpu.memory_space<smem>>
    %c34 = arith.constant 34 : index
    %35 = memref.load %arg3[%c34] : memref<36xf32, #tpu.memory_space<smem>>
    %c35 = arith.constant 35 : index
    %36 = memref.load %arg3[%c35] : memref<36xf32, #tpu.memory_space<smem>>
    %c0_0 = arith.constant 0 : index
    %37 = memref.load %arg4[%c0_0] : memref<1xf32, #tpu.memory_space<smem>>
    %c0_i32 = arith.constant 0 : i32
    %38 = arith.addi %0, %c0_i32 : i32
    %c0_1 = arith.constant 0 : index
    %c0_2 = arith.constant 0 : index
    %39 = arith.index_cast %38 : i32 to index
    %c0_3 = arith.constant 0 : index
    %40 = vector.load %arg2[%c0_1, %c0_2, %39, %c0_3] : memref<1x4x16x16xf32, #tpu.memory_space<vmem>>, vector<1x1x14x16xf32>
    %41 = vector.shape_cast %40 : vector<1x1x14x16xf32> to vector<14x16xf32>
    %42 = vector.extract_strided_slice %41 {offsets = [0, 0], sizes = [14, 14], strides = [1, 1]} : vector<14x16xf32> to vector<14x14xf32>
    %43 = vector.broadcast %1 : f32 to vector<14x14xf32>
    %44 = arith.mulf %42, %43 : vector<14x14xf32>
    %45 = vector.extract_strided_slice %41 {offsets = [0, 1], sizes = [14, 14], strides = [1, 1]} : vector<14x16xf32> to vector<14x14xf32>
    %46 = vector.broadcast %2 : f32 to vector<14x14xf32>
    %47 = arith.mulf %45, %46 : vector<14x14xf32>
    %48 = arith.addf %44, %47 : vector<14x14xf32>
    %49 = vector.extract_strided_slice %41 {offsets = [0, 2], sizes = [14, 14], strides = [1, 1]} : vector<14x16xf32> to vector<14x14xf32>
    %50 = vector.broadcast %3 : f32 to vector<14x14xf32>
    %51 = arith.mulf %49, %50 : vector<14x14xf32>
    %52 = arith.addf %48, %51 : vector<14x14xf32>
    %c1_i32 = arith.constant 1 : i32
    %53 = arith.addi %0, %c1_i32 : i32
    %c0_4 = arith.constant 0 : index
    %c0_5 = arith.constant 0 : index
    %54 = arith.index_cast %53 : i32 to index
    %c0_6 = arith.constant 0 : index
    %55 = vector.load %arg2[%c0_4, %c0_5, %54, %c0_6] : memref<1x4x16x16xf32, #tpu.memory_space<vmem>>, vector<1x1x14x16xf32>
    %56 = vector.shape_cast %55 : vector<1x1x14x16xf32> to vector<14x16xf32>
    %57 = vector.extract_strided_slice %56 {offsets = [0, 0], sizes = [14, 14], strides = [1, 1]} : vector<14x16xf32> to vector<14x14xf32>
    %58 = vector.broadcast %4 : f32 to vector<14x14xf32>
    %59 = arith.mulf %57, %58 : vector<14x14xf32>
    %60 = arith.addf %52, %59 : vector<14x14xf32>
    %61 = vector.extract_strided_slice %56 {offsets = [0, 1], sizes = [14, 14], strides = [1, 1]} : vector<14x16xf32> to vector<14x14xf32>
    %62 = vector.broadcast %5 : f32 to vector<14x14xf32>
    %63 = arith.mulf %61, %62 : vector<14x14xf32>
    %64 = arith.addf %60, %63 : vector<14x14xf32>
    %65 = vector.extract_strided_slice %56 {offsets = [0, 2], sizes = [14, 14], strides = [1, 1]} : vector<14x16xf32> to vector<14x14xf32>
    %66 = vector.broadcast %6 : f32 to vector<14x14xf32>
    %67 = arith.mulf %65, %66 : vector<14x14xf32>
    %68 = arith.addf %64, %67 : vector<14x14xf32>
    %c2_i32 = arith.constant 2 : i32
    %69 = arith.addi %0, %c2_i32 : i32
    %c0_7 = arith.constant 0 : index
    %c0_8 = arith.constant 0 : index
    %70 = arith.index_cast %69 : i32 to index
    %c0_9 = arith.constant 0 : index
    %71 = vector.load %arg2[%c0_7, %c0_8, %70, %c0_9] : memref<1x4x16x16xf32, #tpu.memory_space<vmem>>, vector<1x1x14x16xf32>
    %72 = vector.shape_cast %71 : vector<1x1x14x16xf32> to vector<14x16xf32>
    %73 = vector.extract_strided_slice %72 {offsets = [0, 0], sizes = [14, 14], strides = [1, 1]} : vector<14x16xf32> to vector<14x14xf32>
    %74 = vector.broadcast %7 : f32 to vector<14x14xf32>
    %75 = arith.mulf %73, %74 : vector<14x14xf32>
    %76 = arith.addf %68, %75 : vector<14x14xf32>
    %77 = vector.extract_strided_slice %72 {offsets = [0, 1], sizes = [14, 14], strides = [1, 1]} : vector<14x16xf32> to vector<14x14xf32>
    %78 = vector.broadcast %8 : f32 to vector<14x14xf32>
    %79 = arith.mulf %77, %78 : vector<14x14xf32>
    %80 = arith.addf %76, %79 : vector<14x14xf32>
    %81 = vector.extract_strided_slice %72 {offsets = [0, 2], sizes = [14, 14], strides = [1, 1]} : vector<14x16xf32> to vector<14x14xf32>
    %82 = vector.broadcast %9 : f32 to vector<14x14xf32>
    %83 = arith.mulf %81, %82 : vector<14x14xf32>
    %84 = arith.addf %80, %83 : vector<14x14xf32>
    %c0_i32_10 = arith.constant 0 : i32
    %85 = arith.addi %0, %c0_i32_10 : i32
    %c0_11 = arith.constant 0 : index
    %c1_12 = arith.constant 1 : index
    %86 = arith.index_cast %85 : i32 to index
    %c0_13 = arith.constant 0 : index
    %87 = vector.load %arg2[%c0_11, %c1_12, %86, %c0_13] : memref<1x4x16x16xf32, #tpu.memory_space<vmem>>, vector<1x1x14x16xf32>
    %88 = vector.shape_cast %87 : vector<1x1x14x16xf32> to vector<14x16xf32>
    %89 = vector.extract_strided_slice %88 {offsets = [0, 0], sizes = [14, 14], strides = [1, 1]} : vector<14x16xf32> to vector<14x14xf32>
    %90 = vector.broadcast %10 : f32 to vector<14x14xf32>
    %91 = arith.mulf %89, %90 : vector<14x14xf32>
    %92 = vector.extract_strided_slice %88 {offsets = [0, 1], sizes = [14, 14], strides = [1, 1]} : vector<14x16xf32> to vector<14x14xf32>
    %93 = vector.broadcast %11 : f32 to vector<14x14xf32>
    %94 = arith.mulf %92, %93 : vector<14x14xf32>
    %95 = arith.addf %91, %94 : vector<14x14xf32>
    %96 = vector.extract_strided_slice %88 {offsets = [0, 2], sizes = [14, 14], strides = [1, 1]} : vector<14x16xf32> to vector<14x14xf32>
    %97 = vector.broadcast %12 : f32 to vector<14x14xf32>
    %98 = arith.mulf %96, %97 : vector<14x14xf32>
    %99 = arith.addf %95, %98 : vector<14x14xf32>
    %c1_i32_14 = arith.constant 1 : i32
    %100 = arith.addi %0, %c1_i32_14 : i32
    %c0_15 = arith.constant 0 : index
    %c1_16 = arith.constant 1 : index
    %101 = arith.index_cast %100 : i32 to index
    %c0_17 = arith.constant 0 : index
    %102 = vector.load %arg2[%c0_15, %c1_16, %101, %c0_17] : memref<1x4x16x16xf32, #tpu.memory_space<vmem>>, vector<1x1x14x16xf32>
    %103 = vector.shape_cast %102 : vector<1x1x14x16xf32> to vector<14x16xf32>
    %104 = vector.extract_strided_slice %103 {offsets = [0, 0], sizes = [14, 14], strides = [1, 1]} : vector<14x16xf32> to vector<14x14xf32>
    %105 = vector.broadcast %13 : f32 to vector<14x14xf32>
    %106 = arith.mulf %104, %105 : vector<14x14xf32>
    %107 = arith.addf %99, %106 : vector<14x14xf32>
    %108 = vector.extract_strided_slice %103 {offsets = [0, 1], sizes = [14, 14], strides = [1, 1]} : vector<14x16xf32> to vector<14x14xf32>
    %109 = vector.broadcast %14 : f32 to vector<14x14xf32>
    %110 = arith.mulf %108, %109 : vector<14x14xf32>
    %111 = arith.addf %107, %110 : vector<14x14xf32>
    %112 = vector.extract_strided_slice %103 {offsets = [0, 2], sizes = [14, 14], strides = [1, 1]} : vector<14x16xf32> to vector<14x14xf32>
    %113 = vector.broadcast %15 : f32 to vector<14x14xf32>
    %114 = arith.mulf %112, %113 : vector<14x14xf32>
    %115 = arith.addf %111, %114 : vector<14x14xf32>
    %c2_i32_18 = arith.constant 2 : i32
    %116 = arith.addi %0, %c2_i32_18 : i32
    %c0_19 = arith.constant 0 : index
    %c1_20 = arith.constant 1 : index
    %117 = arith.index_cast %116 : i32 to index
    %c0_21 = arith.constant 0 : index
    %118 = vector.load %arg2[%c0_19, %c1_20, %117, %c0_21] : memref<1x4x16x16xf32, #tpu.memory_space<vmem>>, vector<1x1x14x16xf32>
    %119 = vector.shape_cast %118 : vector<1x1x14x16xf32> to vector<14x16xf32>
    %120 = vector.extract_strided_slice %119 {offsets = [0, 0], sizes = [14, 14], strides = [1, 1]} : vector<14x16xf32> to vector<14x14xf32>
    %121 = vector.broadcast %16 : f32 to vector<14x14xf32>
    %122 = arith.mulf %120, %121 : vector<14x14xf32>
    %123 = arith.addf %115, %122 : vector<14x14xf32>
    %124 = vector.extract_strided_slice %119 {offsets = [0, 1], sizes = [14, 14], strides = [1, 1]} : vector<14x16xf32> to vector<14x14xf32>
    %125 = vector.broadcast %17 : f32 to vector<14x14xf32>
    %126 = arith.mulf %124, %125 : vector<14x14xf32>
    %127 = arith.addf %123, %126 : vector<14x14xf32>
    %128 = vector.extract_strided_slice %119 {offsets = [0, 2], sizes = [14, 14], strides = [1, 1]} : vector<14x16xf32> to vector<14x14xf32>
    %129 = vector.broadcast %18 : f32 to vector<14x14xf32>
    %130 = arith.mulf %128, %129 : vector<14x14xf32>
    %131 = arith.addf %127, %130 : vector<14x14xf32>
    %c0_i32_22 = arith.constant 0 : i32
    %132 = arith.addi %0, %c0_i32_22 : i32
    %c0_23 = arith.constant 0 : index
    %c2_24 = arith.constant 2 : index
    %133 = arith.index_cast %132 : i32 to index
    %c0_25 = arith.constant 0 : index
    %134 = vector.load %arg2[%c0_23, %c2_24, %133, %c0_25] : memref<1x4x16x16xf32, #tpu.memory_space<vmem>>, vector<1x1x14x16xf32>
    %135 = vector.shape_cast %134 : vector<1x1x14x16xf32> to vector<14x16xf32>
    %136 = vector.extract_strided_slice %135 {offsets = [0, 0], sizes = [14, 14], strides = [1, 1]} : vector<14x16xf32> to vector<14x14xf32>
    %137 = vector.broadcast %19 : f32 to vector<14x14xf32>
    %138 = arith.mulf %136, %137 : vector<14x14xf32>
    %139 = vector.extract_strided_slice %135 {offsets = [0, 1], sizes = [14, 14], strides = [1, 1]} : vector<14x16xf32> to vector<14x14xf32>
    %140 = vector.broadcast %20 : f32 to vector<14x14xf32>
    %141 = arith.mulf %139, %140 : vector<14x14xf32>
    %142 = arith.addf %138, %141 : vector<14x14xf32>
    %143 = vector.extract_strided_slice %135 {offsets = [0, 2], sizes = [14, 14], strides = [1, 1]} : vector<14x16xf32> to vector<14x14xf32>
    %144 = vector.broadcast %21 : f32 to vector<14x14xf32>
    %145 = arith.mulf %143, %144 : vector<14x14xf32>
    %146 = arith.addf %142, %145 : vector<14x14xf32>
    %c1_i32_26 = arith.constant 1 : i32
    %147 = arith.addi %0, %c1_i32_26 : i32
    %c0_27 = arith.constant 0 : index
    %c2_28 = arith.constant 2 : index
    %148 = arith.index_cast %147 : i32 to index
    %c0_29 = arith.constant 0 : index
    %149 = vector.load %arg2[%c0_27, %c2_28, %148, %c0_29] : memref<1x4x16x16xf32, #tpu.memory_space<vmem>>, vector<1x1x14x16xf32>
    %150 = vector.shape_cast %149 : vector<1x1x14x16xf32> to vector<14x16xf32>
    %151 = vector.extract_strided_slice %150 {offsets = [0, 0], sizes = [14, 14], strides = [1, 1]} : vector<14x16xf32> to vector<14x14xf32>
    %152 = vector.broadcast %22 : f32 to vector<14x14xf32>
    %153 = arith.mulf %151, %152 : vector<14x14xf32>
    %154 = arith.addf %146, %153 : vector<14x14xf32>
    %155 = vector.extract_strided_slice %150 {offsets = [0, 1], sizes = [14, 14], strides = [1, 1]} : vector<14x16xf32> to vector<14x14xf32>
    %156 = vector.broadcast %23 : f32 to vector<14x14xf32>
    %157 = arith.mulf %155, %156 : vector<14x14xf32>
    %158 = arith.addf %154, %157 : vector<14x14xf32>
    %159 = vector.extract_strided_slice %150 {offsets = [0, 2], sizes = [14, 14], strides = [1, 1]} : vector<14x16xf32> to vector<14x14xf32>
    %160 = vector.broadcast %24 : f32 to vector<14x14xf32>
    %161 = arith.mulf %159, %160 : vector<14x14xf32>
    %162 = arith.addf %158, %161 : vector<14x14xf32>
    %c2_i32_30 = arith.constant 2 : i32
    %163 = arith.addi %0, %c2_i32_30 : i32
    %c0_31 = arith.constant 0 : index
    %c2_32 = arith.constant 2 : index
    %164 = arith.index_cast %163 : i32 to index
    %c0_33 = arith.constant 0 : index
    %165 = vector.load %arg2[%c0_31, %c2_32, %164, %c0_33] : memref<1x4x16x16xf32, #tpu.memory_space<vmem>>, vector<1x1x14x16xf32>
    %166 = vector.shape_cast %165 : vector<1x1x14x16xf32> to vector<14x16xf32>
    %167 = vector.extract_strided_slice %166 {offsets = [0, 0], sizes = [14, 14], strides = [1, 1]} : vector<14x16xf32> to vector<14x14xf32>
    %168 = vector.broadcast %25 : f32 to vector<14x14xf32>
    %169 = arith.mulf %167, %168 : vector<14x14xf32>
    %170 = arith.addf %162, %169 : vector<14x14xf32>
    %171 = vector.extract_strided_slice %166 {offsets = [0, 1], sizes = [14, 14], strides = [1, 1]} : vector<14x16xf32> to vector<14x14xf32>
    %172 = vector.broadcast %26 : f32 to vector<14x14xf32>
    %173 = arith.mulf %171, %172 : vector<14x14xf32>
    %174 = arith.addf %170, %173 : vector<14x14xf32>
    %175 = vector.extract_strided_slice %166 {offsets = [0, 2], sizes = [14, 14], strides = [1, 1]} : vector<14x16xf32> to vector<14x14xf32>
    %176 = vector.broadcast %27 : f32 to vector<14x14xf32>
    %177 = arith.mulf %175, %176 : vector<14x14xf32>
    %178 = arith.addf %174, %177 : vector<14x14xf32>
    %c0_i32_34 = arith.constant 0 : i32
    %179 = arith.addi %0, %c0_i32_34 : i32
    %c0_35 = arith.constant 0 : index
    %c3_36 = arith.constant 3 : index
    %180 = arith.index_cast %179 : i32 to index
    %c0_37 = arith.constant 0 : index
    %181 = vector.load %arg2[%c0_35, %c3_36, %180, %c0_37] : memref<1x4x16x16xf32, #tpu.memory_space<vmem>>, vector<1x1x14x16xf32>
    %182 = vector.shape_cast %181 : vector<1x1x14x16xf32> to vector<14x16xf32>
    %183 = vector.extract_strided_slice %182 {offsets = [0, 0], sizes = [14, 14], strides = [1, 1]} : vector<14x16xf32> to vector<14x14xf32>
    %184 = vector.broadcast %28 : f32 to vector<14x14xf32>
    %185 = arith.mulf %183, %184 : vector<14x14xf32>
    %186 = vector.extract_strided_slice %182 {offsets = [0, 1], sizes = [14, 14], strides = [1, 1]} : vector<14x16xf32> to vector<14x14xf32>
    %187 = vector.broadcast %29 : f32 to vector<14x14xf32>
    %188 = arith.mulf %186, %187 : vector<14x14xf32>
    %189 = arith.addf %185, %188 : vector<14x14xf32>
    %190 = vector.extract_strided_slice %182 {offsets = [0, 2], sizes = [14, 14], strides = [1, 1]} : vector<14x16xf32> to vector<14x14xf32>
    %191 = vector.broadcast %30 : f32 to vector<14x14xf32>
    %192 = arith.mulf %190, %191 : vector<14x14xf32>
    %193 = arith.addf %189, %192 : vector<14x14xf32>
    %c1_i32_38 = arith.constant 1 : i32
    %194 = arith.addi %0, %c1_i32_38 : i32
    %c0_39 = arith.constant 0 : index
    %c3_40 = arith.constant 3 : index
    %195 = arith.index_cast %194 : i32 to index
    %c0_41 = arith.constant 0 : index
    %196 = vector.load %arg2[%c0_39, %c3_40, %195, %c0_41] : memref<1x4x16x16xf32, #tpu.memory_space<vmem>>, vector<1x1x14x16xf32>
    %197 = vector.shape_cast %196 : vector<1x1x14x16xf32> to vector<14x16xf32>
    %198 = vector.extract_strided_slice %197 {offsets = [0, 0], sizes = [14, 14], strides = [1, 1]} : vector<14x16xf32> to vector<14x14xf32>
    %199 = vector.broadcast %31 : f32 to vector<14x14xf32>
    %200 = arith.mulf %198, %199 : vector<14x14xf32>
    %201 = arith.addf %193, %200 : vector<14x14xf32>
    %202 = vector.extract_strided_slice %197 {offsets = [0, 1], sizes = [14, 14], strides = [1, 1]} : vector<14x16xf32> to vector<14x14xf32>
    %203 = vector.broadcast %32 : f32 to vector<14x14xf32>
    %204 = arith.mulf %202, %203 : vector<14x14xf32>
    %205 = arith.addf %201, %204 : vector<14x14xf32>
    %206 = vector.extract_strided_slice %197 {offsets = [0, 2], sizes = [14, 14], strides = [1, 1]} : vector<14x16xf32> to vector<14x14xf32>
    %207 = vector.broadcast %33 : f32 to vector<14x14xf32>
    %208 = arith.mulf %206, %207 : vector<14x14xf32>
    %209 = arith.addf %205, %208 : vector<14x14xf32>
    %c2_i32_42 = arith.constant 2 : i32
    %210 = arith.addi %0, %c2_i32_42 : i32
    %c0_43 = arith.constant 0 : index
    %c3_44 = arith.constant 3 : index
    %211 = arith.index_cast %210 : i32 to index
    %c0_45 = arith.constant 0 : index
    %212 = vector.load %arg2[%c0_43, %c3_44, %211, %c0_45] : memref<1x4x16x16xf32, #tpu.memory_space<vmem>>, vector<1x1x14x16xf32>
    %213 = vector.shape_cast %212 : vector<1x1x14x16xf32> to vector<14x16xf32>
    %214 = vector.extract_strided_slice %213 {offsets = [0, 0], sizes = [14, 14], strides = [1, 1]} : vector<14x16xf32> to vector<14x14xf32>
    %215 = vector.broadcast %34 : f32 to vector<14x14xf32>
    %216 = arith.mulf %214, %215 : vector<14x14xf32>
    %217 = arith.addf %209, %216 : vector<14x14xf32>
    %218 = vector.extract_strided_slice %213 {offsets = [0, 1], sizes = [14, 14], strides = [1, 1]} : vector<14x16xf32> to vector<14x14xf32>
    %219 = vector.broadcast %35 : f32 to vector<14x14xf32>
    %220 = arith.mulf %218, %219 : vector<14x14xf32>
    %221 = arith.addf %217, %220 : vector<14x14xf32>
    %222 = vector.extract_strided_slice %213 {offsets = [0, 2], sizes = [14, 14], strides = [1, 1]} : vector<14x16xf32> to vector<14x14xf32>
    %223 = vector.broadcast %36 : f32 to vector<14x14xf32>
    %224 = arith.mulf %222, %223 : vector<14x14xf32>
    %225 = arith.addf %221, %224 : vector<14x14xf32>
    %226 = arith.addf %84, %131 : vector<14x14xf32>
    %227 = arith.addf %178, %225 : vector<14x14xf32>
    %228 = arith.addf %226, %227 : vector<14x14xf32>
    %229 = vector.broadcast %37 : f32 to vector<14x14xf32>
    %230 = arith.addf %228, %229 : vector<14x14xf32>
    %c0_46 = arith.constant 0 : index
    %c0_47 = arith.constant 0 : index
    %c0_48 = arith.constant 0 : index
    %c0_49 = arith.constant 0 : index
    %231 = vector.load %arg5[%c0_46, %c0_47, %c0_48, %c0_49] : memref<1x1x14x14xf32, #tpu.memory_space<vmem>>, vector<1x1x14x14xf32>
    %232 = vector.shape_cast %231 : vector<1x1x14x14xf32> to vector<14x14xf32>
    %233 = vector.shape_cast %230 : vector<14x14xf32> to vector<1x1x14x14xf32>
    tpu.vector_store %arg5[%c0_46, %c0_47, %c0_48, %c0_49], %233 {strides = array<i32>} : memref<1x1x14x14xf32, #tpu.memory_space<vmem>>, vector<1x1x14x14xf32>,
    return
  }
  func.func @transform_0(%arg0: i32, %arg1: i32) -> (i32, i32, i32, i32) {
    %c0_i32 = arith.constant 0 : i32
    %c0_i32_0 = arith.constant 0 : i32
    %c0_i32_1 = arith.constant 0 : i32
    %c0_i32_2 = arith.constant 0 : i32
    return %arg0, %c0_i32, %c0_i32_0, %c0_i32_1 : i32, i32, i32, i32
  }
  func.func @transform_1(%arg0: i32, %arg1: i32) -> i32 {
    %c0_i32 = arith.constant 0 : i32
    %c0_i32_0 = arith.constant 0 : i32
    return %c0_i32 : i32
  }
  func.func @transform_2(%arg0: i32, %arg1: i32) -> i32 {
    %c0_i32 = arith.constant 0 : i32
    %c0_i32_0 = arith.constant 0 : i32
    return %c0_i32 : i32
  }
  func.func @transform_3(%arg0: i32, %arg1: i32) -> (i32, i32, i32, i32) {
    %c0_i32 = arith.constant 0 : i32
    %c0_i32_0 = arith.constant 0 : i32
    %c0_i32_1 = arith.constant 0 : i32
    return %arg0, %c0_i32, %arg1, %c0_i32_0 : i32, i32, i32, i32
  }
}

</mosaic_0001>

<bundles_post_ra>
// kernel: tpu_custom_call.1
= control target key start
LH: loop header
LB: loop body
LE: loop exit
PB: predicated region body
PF: predicated region fallthrough
CT: control target
= control target key end

     0   :  { %s1424_s0 = inlined_call_operand.hbm [shape: f32[2,4,16,16], index: 0, kind: input, shape index: {}]   ;;  %s1425_s1 = inlined_call_operand.vmem [shape: f32[36], index: 1, kind: input, shape index: {}]   ;;  %s1426_s2 = inlined_call_operand.<no memory space> [shape: f32[1], index: 2, kind: input, shape index: {}]   ;;  %s1427_s3 = inlined_call_operand.vmem [shape: f32[2,1,14,14], index: 3, kind: output, shape index: {}]  }
   0x1   :  { %8 = sst [smem:[#allocation2]] %s1426_s2 }
   0x2   :  { %9 = vsyncpa [#allocation4], 0 }
   0x3   :  { %11 = vsyncpa [#allocation4 + $0x1], 0 }
   0x4   :  { %12 = vsyncpa [#allocation5], 0  ;;  %s1105_s14 = smov 0   ;;  %s1107_s15 = smov 0  }
   0x5   :  { %s1109_s16 = smov 0   ;;  %s1111_s17 = smov 0  }
   0x6   :  { %s1113_s18 = smov 0   ;;  %s1115_s19 = smov 0  }
   0x7 LB: > { %s832_s2 = sadd.s32 4294967295, %s1075_s19   ;;  %s37_s20 = sadd.s32 1, %s1063_s16  ;;  %s1075_s19 = sphi %s1115_s19, %s18_s19   ;;  %s1071_s18 = sphi %s1113_s18, %s1436_s18   ;;  %s1067_s17 = sphi %s1111_s17, %s1435_s17   ;;  %s1063_s16 = sphi %s1109_s16, %s1434_s16   ;;  %s1059_s15 = sphi %s1107_s15, %s1433_s15   ;;  %s1055_s14 = sphi %s1105_s14, %s1432_s14  }
   0x8   : > { %p44_p0 = scmp.ne.s32.totalorder %s1063_s16, %s1059_s15  ;;  %p45_p1 = scmp.eq.s32.totalorder %s1075_s19, 0 }
   0x9   : > { %p50_p2 = scmp.ne.s32.totalorder %s1059_s15, %s1055_s14  ;;  %p1139_p3 = scmp.eq.s32.totalorder %s832_s2, 0 }
   0xa   : > { %p46_p4 = por %p45_p1, %p44_p0  ;;  %p834_p5 = scmp.ge.s32.totalorder %s1075_s19, 1 }
   0xb   : > { %p1146_p6 = por %p1139_p3, %p50_p2  ;;  %p131_p7 = scmp.lt.s32.totalorder %s1075_s19, 3 }
   0xc   : > { %s143_s25 = sshll.u32 %s1425_s1, 4  ;;  %p921_p10 = scmp.lt.s32.totalorder %s1075_s19, 2  ;;  %s144_s25 = int_to_ptr.vmem [resolvable:$true] %s143_s25 }
   0xd   : > { %p1154_p8 = pnand %p834_p5, %p131_p7  ;;  %s157_s27 = sand.u32 1, %s1063_s16  }
   0xe   : > { %p1164_p12 = pnand %p921_p10, %p46_p4  ;;  %s1077_s29 = smov [#allocation6]  }
   0xf   : > { %p912_p9 = pneg %p1154_p8  ;;  %s30_s30 = sadd.s32 1, %s1071_s18 }
  0x10   : > { %s837_s4 = sshll.u32 %s157_s27, 6  ;;  %p32_p13 = scmp.ge.s32.totalorder %s30_s30, 2 }
  0x11   : > { %p913_p11 = pnand %p912_p9, %p1139_p3  ;;  %s904_s5 = sshll.u32 %s1071_s18, 6 }
  0x12   : > { %s161_s6 = scalar_lea.vmem [#allocation3], %s837_s4  ;;  %s1438_s30 = smov (%p32_p13, %s30_s30), 0 }
  0x13   : > { %915 = dma.vmem_to_smem (!%p913_p11), %s144_s25, 16, %s1077_s29, [#allocation5]  }
  0x14   : > { %s169_s7 = sshll.u32 %s161_s6, 4  ;;  %s166_s10 = scalar_lea.hbm %s1424_s0, %s904_s5  ;;  %s170_s7 = int_to_ptr.vmem [resolvable:$true] %s169_s7 }
  0x15   : > { %s34_s11 = ssub.s32 %s1071_s18, %s1438_s30  ;;  %s167_s12 = sshll.u32 %s166_s10, 4  ;;  %s168_s12 = int_to_ptr.hbm [resolvable:$true] %s167_s12 }
  0x16   : > { %p35_p0 = scmp.eq.s32.totalorder %s34_s11, 0  ;;  %s158_s14 = scalar_lea.sflag [#allocation4], %s157_s27 }
  0x17   : > { %s1078_s2 = smov 128   ;;  %s1079_s23 = smov 8  }
  0x18   : > { %s1180_s13 = scalar_select %p35_p0, %s1063_s16, %s37_s20  }
  0x19   : > { %919 = dma.hbm_to_vmem [thread:$0]  (!%p1164_p12), %s168_s12, 1024, %s170_s7, %s158_s14, %s1078_s2, %s1078_s2, %s1079_s23  }
  0x1a   : > { %181 = sbr.rel (%p1154_p8) target bundleno = 290 (0x122), region = 32  ;;  %s183_s24 = sand.u32 (!%p1154_p8), 1, %s1059_s15  }
  0x1b   : > { %s841_s25 = sshll.u32 (!%p1154_p8), %s183_s24, 6  ;;  %s184_s29 = scalar_lea.sflag (!%p1154_p8), [#allocation4], %s183_s24 }
  0x1c   : > { %s1187_s4 = scalar_lea.vmem (!%p1154_p8), [#allocation3], %s841_s25 }
  0x1f   : > { %1046 = dma.done.wait (%p1146_p6), %s184_s29, 1024  }
  0x20   : > { %1048 = vsyncadd (%p1146_p6), %s184_s29, 4294966272 }
  0x21   : > { %1050 = dma.done.wait (%p1139_p3), [#allocation5], 16  }
  0x22   : > { %1052 = vsyncadd (%p1139_p3), [#allocation5], 4294967280 }
  0x23   : > { %198 = sfence }
  0x24   : > { %s846_s20 = sld [smem:[#allocation6 + $0x2]]  ;;  %v1198_v0 = vld [vmem:[%s1187_s4] sm:$0xff]  ;;  %s1080_s21 = smov 126   ;;  %v1208_v8 = vld [vmem:[%s1187_s4 + $0x8] sm:$0x3f]  ;;  %v1242_v26 = vld [vmem:[%s1187_s4 + $0x10] sm:$0xff] }
  0x25   : > { %s845_s26 = sld [smem:[#allocation6 + $0x1]]  ;;  %v1201_v2 = vld [vmem:[%s1187_s4 + $0x1] sm:$0xff]  ;;  %s1081_s22 = smov 127   ;;  %v1215_v11 = vld [vmem:[%s1187_s4 + $0x9] sm:$0x3f]  ;;  %v1251_v31 = vld [vmem:[%s1187_s4 + $0x11] sm:$0xff] }
  0x26   : > { %s848_s27 = sld [smem:[#allocation6 + $0x4]]  ;;  %v1224_v16 = vld [vmem:[%s1187_s4 + $0x2] sm:$0xff]  ;;  %v1230_v20 = vld [vmem:[%s1187_s4 + $0xa] sm:$0x3f]  ;;  %v1239_v24 = vld [vmem:[%s1187_s4 + $0x18] sm:$0x3f] }
  0x27   : > { %s849_s28 = sld [smem:[#allocation6 + $0x5]]  ;;  %v1257_v35 = vld [vmem:[%s1187_s4 + $0x19] sm:$0x3f]  ;;  %v1281_v48 = vld [vmem:[%s1187_s4 + $0x28] sm:$0x3f]  ;;  %v1284_v50 = vld [vmem:[%s1187_s4 + $0x20] sm:$0xff] }
  0x28   : > { %s851_s5 = sld [smem:[#allocation6 + $0x7]]  ;;  %v1266_v40 = vld [vmem:[%s1187_s4 + $0x12] sm:$0xff]  ;;  %v1272_v44 = vld [vmem:[%s1187_s4 + $0x1a] sm:$0x3f]  ;;  %v1306_v62 = vld [vmem:[%s1187_s4 + $0x21] sm:$0xff]  ;;  %p222_p1 = scmp.lt.s32.totalorder %s1067_s17, 1 }
  0x29   : > { %s852_s6 = sld [smem:[#allocation6 + $0x8]]  ;;  %v1293_v55 = vld [vmem:[%s1187_s4 + $0x30] sm:$0xff]  ;;  %v1299_v59 = vld [vmem:[%s1187_s4 + $0x38] sm:$0x3f]  ;;  %vm689_vm0 = vcmask 113664   ;;  %vm691_vm1 = vcmask 111616  }
  0x2a   : > { %v288_v1 = vstv %s846_s20  ;;  %s854_s7 = sld [smem:[#allocation6 + $0xa]]  ;;  %s1440_s17 = smov (!%p222_p1, %s1067_s17), 1 }
  0x2b   : > { %v289_v3 = vmul.f32 %v288_v1, %v1198_v0  ;;  %v275_v4 = vstv %s845_s26  ;;  %v290_v9 = vmul.f32 %v288_v1, %v1208_v8  ;;  %s855_s8 = sld [smem:[#allocation6 + $0xb]] }
  0x2c   : > { %v276_v5 = vmul.f32 %v275_v4, %v1198_v0  ;;  %v310_v6 = vstv %s848_s27  ;;  %v277_v10 = vmul.f32 %v275_v4, %v1208_v8  ;;  %s857_s9 = sld [smem:[#allocation6 + $0xd]] }
  0x2d   : > { %293 = vrot.lane.b32.xlu1 %v289_v3, %s1080_s21  ;;  %v311_v7 = vmul.f32 %v1201_v2, %v310_v6  ;;  %v312_v12 = vmul.f32 %v1215_v11, %v310_v6  ;;  %v323_v13 = vstv %s849_s28  ;;  %s858_s10 = sld [smem:[#allocation6 + $0xe]] }
  0x2e   : > { %280 = vrot.lane.b32.xlu0 %v276_v5, %s1081_s22  ;;  %v325_v14 = vmul.f32 %v1215_v11, %v323_v13  ;;  %v324_v15 = vmul.f32 %v1201_v2, %v323_v13  ;;  %v345_v17 = vstv %s851_s5  ;;  %s860_s11 = sld [smem:[#allocation6 + $0x10]]  ;;  %v1314_v5 = vld [vmem:[%s1187_s4 + $0x31] sm:$0xff] }
  0x2f   : > { %315 = vrot.lane.b32.xlu2 %v311_v7, %s1081_s22  ;;  %v346_v18 = vmul.f32 %v1224_v16, %v345_v17  ;;  %v358_v19 = vstv %s852_s6  ;;  %v347_v22 = vmul.f32 %v1230_v20, %v345_v17  ;;  %s861_s12 = sld [smem:[#allocation6 + $0x11]]  ;;  %v1317_v7 = vld [vmem:[%s1187_s4 + $0x29] sm:$0x3f] }
  0x30   : > { %v359_v21 = vmul.f32 %v1224_v16, %v358_v19  ;;  %v360_v23 = vmul.f32 %v1230_v20, %v358_v19  ;;  %v378_v25 = vstv %s854_s7  ;;  %s863_s14 = sld [smem:[#allocation6 + $0x13]] }
  0x31   : > { %v380_v27 = vmul.f32 %v1239_v24, %v378_v25  ;;  %v379_v28 = vmul.f32 %v1242_v26, %v378_v25  ;;  %v391_v29 = vstv %s855_s8  ;;  %s864_s2 = sld [smem:[#allocation6 + $0x14]] }
  0x32   : > { %v392_v30 = vmul.f32 %v1242_v26, %v391_v29  ;;  %v413_v32 = vstv %s857_s9  ;;  %v393_v34 = vmul.f32 %v1239_v24, %v391_v29  ;;  %s872_s23 = sld [smem:[#allocation6 + $0x1c]]  ;;  %v1343_v29 = vld [vmem:[%s1187_s4 + $0x2a] sm:$0x3f] }
  0x33   : > { %v414_v33 = vmul.f32 %v1251_v31, %v413_v32  ;;  %v415_v36 = vmul.f32 %v1257_v35, %v413_v32  ;;  %v426_v37 = vstv %s858_s10  ;;  %s873_s24 = sld [smem:[#allocation6 + $0x1d]]  ;;  %v1351_v32 = vld [vmem:[%s1187_s4 + $0x3a] sm:$0x3f] }
  0x34   : > { %v428_v38 = vmul.f32 %v1257_v35, %v426_v37  ;;  %v427_v39 = vmul.f32 %v1251_v31, %v426_v37  ;;  %v448_v41 = vstv %s860_s11  ;;  %s866_s25 = sld [smem:[#allocation6 + $0x16]] }
  0x35   : > { %295 = vrot.lane.b32.xlu1 %v290_v9, %s1080_s21  ;;  %v449_v42 = vmul.f32 %v1266_v40, %v448_v41  ;;  %v461_v43 = vstv %s861_s12  ;;  %v450_v46 = vmul.f32 %v1272_v44, %v448_v41  ;;  %s875_s29 = sld [smem:[#allocation6 + $0x1f]] }
  0x36   : > { %282 = vrot.lane.b32.xlu0 %v277_v10, %s1081_s22  ;;  %v462_v45 = vmul.f32 %v1266_v40, %v461_v43  ;;  %v463_v47 = vmul.f32 %v1272_v44, %v461_v43  ;;  %v481_v49 = vstv %s863_s14  ;;  %s867_s20 = sld [smem:[#allocation6 + $0x17]] }
  0x37   : > { %317 = vrot.lane.b32.xlu2 %v312_v12, %s1081_s22  ;;  %v483_v51 = vmul.f32 %v1281_v48, %v481_v49  ;;  %v482_v52 = vmul.f32 %v1284_v50, %v481_v49  ;;  %v494_v53 = vstv %s864_s2  ;;  %s876_s26 = sld [smem:[#allocation6 + $0x20]]  ;;  %v1323_v12 = vld [vmem:[%s1187_s4 + $0x39] sm:$0x3f] }
  0x38   : > { %v495_v54 = vmul.f32 %v1284_v50, %v494_v53  ;;  %v584_v56 = vstv %s872_s23  ;;  %v496_v58 = vmul.f32 %v1281_v48, %v494_v53  ;;  %s869_s27 = sld [smem:[#allocation6 + $0x19]] }
  0x39   : > { %v585_v57 = vmul.f32 %v1293_v55, %v584_v56  ;;  %v586_v60 = vmul.f32 %v1299_v59, %v584_v56  ;;  %v597_v61 = vstv %s873_s24  ;;  %s878_s28 = sld [smem:[#allocation6 + $0x22]] }
  0x3a   : > { %v599_v63 = vmul.f32 %v1299_v59, %v597_v61  ;;  %v598_v1 = vmul.f32 %v1293_v55, %v597_v61  ;;  %v516_v3 = vstv %s866_s25  ;;  %s1339_s5 = sld [smem:[#allocation6]]  ;;  %s905_s25 = sshll.u32 %s1440_s17, 4 }
  0x3b   : > { %v517_v4 = vmul.f32 %v1306_v62, %v516_v3  ;;  %v619_v6 = vstv %s875_s29  ;;  %v518_v10 = vmul.f32 %v1317_v7, %v516_v3  ;;  %s870_s6 = sld [smem:[#allocation6 + $0x1a]] }
  0x3c   : > { %v620_v9 = vmul.f32 %v1314_v5, %v619_v6  ;;  %v621_v13 = vmul.f32 %v1323_v12, %v619_v6  ;;  %s1346_s7 = sld [smem:[#allocation6 + $0x3]] }
  0x3d   : > { %330 = vrot.lane.b32.xlu1 %v325_v14, %s1080_s21  ;;  %v529_v14 = vstv %s867_s20  ;;  %v632_v19 = vstv %s876_s26  ;;  %s879_s8 = sld [smem:[#allocation6 + $0x23]]  ;;  %s229_s26 = scalar_lea.vmem %s1427_s3, %s905_s25 }
  0x3e   : > { %328 = vrot.lane.b32.xlu0 %v324_v15, %s1080_s21  ;;  %v531_v15 = vmul.f32 %v1317_v7, %v529_v14  ;;  %s859_s9 = sld [smem:[#allocation6 + $0xf]] }
  0x3f   : > { %350 = vrot.lane.b32.xlu2 %v346_v18, %s1081_s22  ;;  %v530_v18 = vmul.f32 %v1306_v62, %v529_v14  ;;  %s862_s10 = sld [smem:[#allocation6 + $0x12]] }
  0x40   : > { %s871_s11 = sld [smem:[#allocation6 + $0x1b]] }
  0x41   : > { %v564_v41 = vstv %s870_s6  ;;  %s865_s12 = sld [smem:[#allocation6 + $0x15]] }
  0x42   : > { %v566_v56 = vmul.f32 %v1343_v29, %v564_v41  ;;  %s874_s14 = sld [smem:[#allocation6 + $0x1e]] }
  0x43   : > { %s868_s2 = sld [smem:[#allocation6 + $0x18]] }
  0x44   : > { %s877_s23 = sld [smem:[#allocation6 + $0x21]] }
  0x45   : > { %363 = vrot.lane.b32.xlu1 %v359_v21, %s1080_s21  ;;  %v633_v21 = vmul.f32 %v1314_v5, %v632_v19  ;;  %s268_s24 = sld [smem:[#allocation2]] }
  0x46   : > { %352 = vrot.lane.b32.xlu0 %v347_v22, %s1081_s22  ;;  %v1335_v22 = vld [vmem:[%s1187_s4 + $0x22] sm:$0xff] }
  0x47   : > { %365 = vrot.lane.b32.xlu2 %v360_v23, %s1080_s21  ;;  %v551_v23 = vstv %s869_s27 }
  0x48   : > { %v552_v25 = vmul.f32 %v1335_v22, %v551_v23 }
  0x4d   : > { %385 = vrot.lane.b32.xlu1 %v380_v27, %s1081_s22 }
  0x4e   : > { %383 = vrot.lane.b32.xlu0 %v379_v28, %s1081_s22  ;;  %v634_v28 = vmul.f32 %v1323_v12, %v632_v19 }
  0x4f   : > { %396 = vrot.lane.b32.xlu2 %v392_v30, %s1080_s21  ;;  %v553_v30 = vmul.f32 %v1343_v29, %v551_v23 }
  0x55   : > { %418 = vrot.lane.b32.xlu1 %v414_v33, %s1081_s22  ;;  %v654_v33 = vstv %s878_s28 }
  0x56   : > { %398 = vrot.lane.b32.xlu0 %v393_v34, %s1080_s21  ;;  %v1354_v34 = vld [vmem:[%s1187_s4 + $0x32] sm:$0xff]  ;;  %s850_s4 = sld [smem:[#allocation6 + $0x6]] }
  0x57   : > { %420 = vrot.lane.b32.xlu2 %v415_v36, %s1081_s22  ;;  %v656_v36 = vmul.f32 %v1351_v32, %v654_v33 }
  0x5d   : > { %433 = vrot.lane.b32.xlu1 %v428_v38, %s1080_s21  ;;  %v655_v38 = vmul.f32 %v1354_v34, %v654_v33 }
  0x5e   : > { %431 = vrot.lane.b32.xlu0 %v427_v39, %s1080_s21  ;;  %v272_v39 = vstv %s1339_s5 }
  0x5f   : > { %453 = vrot.lane.b32.xlu2 %v449_v42, %s1081_s22  ;;  %v565_v42 = vmul.f32 %v1335_v22, %v564_v41  ;;  %v273_v43 = vmul.f32 %v272_v39, %v1198_v0  ;;  %v274_v0 = vmul.f32 %v272_v39, %v1208_v8 }
  0x65   : > { %466 = vrot.lane.b32.xlu1 %v462_v45, %s1080_s21  ;;  %v305_v45 = vstv %s1346_s7 }
  0x66   : > { %455 = vrot.lane.b32.xlu0 %v450_v46, %s1081_s22  ;;  %v667_v46 = vstv %s879_s8  ;;  %v307_v3 = vmul.f32 %v1215_v11, %v305_v45 }
  0x67   : > { %468 = vrot.lane.b32.xlu2 %v463_v47, %s1080_s21  ;;  %v668_v53 = vmul.f32 %v1354_v34, %v667_v46 }
  0x6d   : > { %488 = vrot.lane.b32.xlu1 %v483_v51, %s1081_s22  ;;  %v306_v51 = vmul.f32 %v1201_v2, %v305_v45 }
  0x6e   : > { %486 = vrot.lane.b32.xlu0 %v482_v52, %s1081_s22 }
  0x6f   : > { %499 = vrot.lane.b32.xlu2 %v495_v54, %s1080_s21 }
  0x75   : > { %589 = vrot.lane.b32.xlu1 %v585_v57, %s1081_s22 }
  0x76   : > { %501 = vrot.lane.b32.xlu0 %v496_v58, %s1080_s21  ;;  %v669_v58 = vmul.f32 %v1351_v32, %v667_v46 }
  0x77   : > { %591 = vrot.lane.b32.xlu2 %v586_v60, %s1081_s22 }
  0x7d   : > { %604 = vrot.lane.b32.xlu1 %v599_v63, %s1080_s21 }
  0x7e   : > { %602 = vrot.lane.b32.xlu0 %v598_v1, %s1080_s21 }
  0x7f   : > { %521 = vrot.lane.b32.xlu2 %v517_v4, %s1081_s22 }
  0x85   : > { %624 = vrot.lane.b32.xlu1 %v620_v9, %s1081_s22  ;;  %v340_v9 = vstv %s850_s4 }
  0x86   : > { %523 = vrot.lane.b32.xlu0 %v518_v10, %s1081_s22 }
  0x87   : > { %626 = vrot.lane.b32.xlu2 %v621_v13, %s1081_s22 }
  0x89   : > { %v316_v17 = vpop.permute.xlu2 %315 }
  0x8d   : > { %536 = vrot.lane.b32.xlu1 %v531_v15, %s1080_s21  ;;  %v341_v15 = vmul.f32 %v1224_v16, %v340_v9 }
  0x8e   : > { %534 = vrot.lane.b32.xlu0 %v530_v18, %s1080_s21 }
  0x8f   : > { %637 = vrot.lane.b32.xlu2 %v633_v21, %s1080_s21 }
  0x91   : > { %v318_v27 = vpop.permute.xlu2 %317 }
  0x95   : > { %556 = vrot.lane.b32.xlu1 %v552_v25, %s1081_s22 }
  0x96   : > { %639 = vrot.lane.b32.xlu0 %v634_v28, %s1080_s21 }
  0x97   : > { %558 = vrot.lane.b32.xlu2 %v553_v30, %s1081_s22 }
  0x99   : > { %v351_v37 = vpop.permute.xlu2 %350 }
  0x9d   : > { %661 = vrot.lane.b32.xlu1 %v656_v36, %s1081_s22 }
  0x9e   : > { %659 = vrot.lane.b32.xlu0 %v655_v38, %s1081_s22  ;;  %s853_s22 = sld [smem:[#allocation6 + $0x9]] }
  0x9f   : > { %v294_v47 = vpop.permute.xlu1 %293  ;;  %569 = vrot.lane.b32.xlu2 %v565_v42, %s1080_s21 }
  0xa0   : > { %v281_v49 = vpop.permute.xlu0 %280 }
  0xa1   : > { %v286_v52 = vadd.f32 %v281_v49, %v273_v43  ;;  %v366_v54 = vpop.permute.xlu2 %365 }
  0xa3   : > { %v299_v57 = vadd.f32 %v294_v47, %v286_v52 }
  0xa4   : > { %v375_v38 = vstv %s853_s22 }
  0xa5   : > { %672 = vrot.lane.b32.xlu1 %v668_v53, %s1080_s21  ;;  %v308_v60 = vadd.f32 %v306_v51, %v299_v57 }
  0xa6   : > { %571 = vrot.lane.b32.xlu0 %v566_v56, %s1080_s21 }
  0xa7   : > { %v296_v61 = vpop.permute.xlu1 %295  ;;  %v321_v63 = vadd.f32 %v316_v17, %v308_v60  ;;  %674 = vrot.lane.b32.xlu2 %v669_v58, %s1080_s21  ;;  %v342_v17 = vmul.f32 %v1230_v20, %v340_v9  ;;  %s856_s21 = sld [smem:[#allocation6 + $0xc]]  ;;  %v377_v20 = vmul.f32 %v1239_v24, %v375_v38  ;;  %v443_v58 = vstv %s859_s9 }
  0xa8   : > { %v283_v2 = vpop.permute.xlu0 %282 }
  0xa9   : > { %v287_v1 = vadd.f32 %v283_v2, %v274_v0  ;;  %v397_v4 = vpop.permute.xlu2 %396 }
  0xab   : > { %v300_v6 = vadd.f32 %v296_v61, %v287_v1  ;;  %v444_v61 = vmul.f32 %v1266_v40, %v443_v58 }
  0xad   : > { %v309_v10 = vadd.f32 %v307_v3, %v300_v6  ;;  %v408_v42 = vstv %s856_s21  ;;  %v445_v3 = vmul.f32 %v1272_v44, %v443_v58 }
  0xae   : > { %v409_v46 = vmul.f32 %v1251_v31, %v408_v42  ;;  %v410_v52 = vmul.f32 %v1257_v35, %v408_v42 }
  0xaf   : > { %v331_v13 = vpop.permute.xlu1 %330  ;;  %v322_v14 = vadd.f32 %v318_v27, %v309_v10  ;;  %v376_v27 = vmul.f32 %v1242_v26, %v375_v38  ;;  %v478_v38 = vstv %s862_s10 }
  0xb0   : > { %v329_v8 = vpop.permute.xlu0 %328 }
  0xb1   : > { %v335_v18 = vadd.f32 %v331_v13, %v322_v14  ;;  %v334_v19 = vadd.f32 %v329_v8, %v321_v63  ;;  %v421_v23 = vpop.permute.xlu2 %420 }
  0xb3   : > { %v343_v21 = vadd.f32 %v341_v15, %v334_v19  ;;  %v344_v30 = vadd.f32 %v342_v17, %v335_v18 }
  0xb5   : > { %v356_v25 = vadd.f32 %v351_v37, %v343_v21 }
  0xb7   : > { %v364_v28 = vpop.permute.xlu1 %363 }
  0xb8   : > { %v369_v11 = vadd.f32 %v364_v28, %v356_v25  ;;  %v353_v33 = vpop.permute.xlu0 %352 }
  0xb9   : > { %v357_v36 = vadd.f32 %v353_v33, %v344_v30  ;;  %v454_v16 = vpop.permute.xlu2 %453 }
  0xbb   : > { %v370_v39 = vadd.f32 %v366_v54, %v357_v36 }
  0xbf   : > { %v386_v41 = vpop.permute.xlu1 %385 }
  0xc0   : > { %v384_v43 = vpop.permute.xlu0 %383  ;;  %v390_v49 = vadd.f32 %v386_v41, %v377_v20  ;;  %v614_v20 = vstv %s874_s14 }
  0xc1   : > { %v389_v45 = vadd.f32 %v384_v43, %v376_v27  ;;  %v469_v56 = vpop.permute.xlu2 %468 }
  0xc3   : > { %v402_v37 = vadd.f32 %v397_v4, %v389_v45  ;;  %v480_v45 = vmul.f32 %v1281_v48, %v478_v38 }
  0xc5   : > { %v411_v47 = vadd.f32 %v409_v46, %v402_v37  ;;  %v511_v46 = vstv %s865_s12 }
  0xc6   : > { %v513_v48 = vmul.f32 %v1317_v7, %v511_v46 }
  0xc7   : > { %v419_v51 = vpop.permute.xlu1 %418 }
  0xc8   : > { %v424_v53 = vadd.f32 %v419_v51, %v411_v47  ;;  %v399_v54 = vpop.permute.xlu0 %398  ;;  %v512_v51 = vmul.f32 %v1306_v62, %v511_v46 }
  0xc9   : > { %v403_v26 = vadd.f32 %v399_v54, %v390_v49  ;;  %v500_v2 = vpop.permute.xlu2 %499 }
  0xcb   : > { %v412_v57 = vadd.f32 %v410_v52, %v403_v26 }
  0xcd   : > { %v425_v0 = vadd.f32 %v421_v23, %v412_v57 }
  0xcf   : > { %v434_v60 = vpop.permute.xlu1 %433 }
  0xd0   : > { %v438_v31 = vadd.f32 %v434_v60, %v425_v0  ;;  %v432_v63 = vpop.permute.xlu0 %431 }
  0xd1   : > { %v437_v24 = vadd.f32 %v432_v63, %v424_v53  ;;  %v592_v8 = vpop.permute.xlu2 %591 }
  0xd2   : > { %v447_v35 = vadd.f32 %v445_v3, %v438_v31  ;;  %v546_v31 = vstv %s868_s2 }
  0xd3   : > { %v446_v1 = vadd.f32 %v444_v61, %v437_v24  ;;  %v548_v7 = vmul.f32 %v1343_v29, %v546_v31 }
  0xd5   : > { %v459_v4 = vadd.f32 %v454_v16, %v446_v1  ;;  %v649_v1 = vstv %s877_s23 }
  0xd7   : > { %v467_v6 = vpop.permute.xlu1 %466 }
  0xd8   : > { %v472_v9 = vadd.f32 %v467_v6, %v459_v4  ;;  %v456_v10 = vpop.permute.xlu0 %455 }
  0xd9   : > { %v460_v13 = vadd.f32 %v456_v10, %v447_v35  ;;  %v522_v21 = vpop.permute.xlu2 %521  ;;  %v651_v35 = vmul.f32 %v1351_v32, %v649_v1 }
  0xda   : > { %v1383_v14 = vadd.f32 %v472_v9, %v369_v11  ;;  %v581_v11 = vstv %s871_s11 }
  0xdb   : > { %v473_v15 = vadd.f32 %v469_v56, %v460_v13  ;;  %v583_v27 = vmul.f32 %v1299_v59, %v581_v11  ;;  %v582_v42 = vmul.f32 %v1293_v55, %v581_v11  ;;  %v616_v59 = vmul.f32 %v1323_v12, %v614_v20 }
  0xdc   : > { %v615_v55 = vmul.f32 %v1314_v5, %v614_v20  ;;  %v547_v5 = vmul.f32 %v1335_v22, %v546_v31  ;;  %v650_v13 = vmul.f32 %v1354_v34, %v649_v1 }
  0xdd   : > { %v1385_v18 = vadd.f32 %v473_v15, %v370_v39  ;;  %v479_v39 = vmul.f32 %v1284_v50, %v478_v38  ;;  %v596_v47 = vadd.f32 %v592_v8, %v583_v27  ;;  %v686_v38 = vstv %s268_s24 }
  0xdf   : > { %v489_v40 = vpop.permute.xlu1 %488 }
  0xe0   : > { %v487_v19 = vpop.permute.xlu0 %486  ;;  %v493_v53 = vadd.f32 %v489_v40, %v480_v45 }
  0xe1   : > { %v627_v25 = vpop.permute.xlu2 %626  ;;  %v492_v41 = vadd.f32 %v487_v19, %v479_v39 }
  0xe3   : > { %v505_v49 = vadd.f32 %v500_v2, %v492_v41 }
  0xe5   : > { %v514_v57 = vadd.f32 %v512_v51, %v505_v49 }
  0xe7   : > { %v590_v17 = vpop.permute.xlu1 %589  ;;  %v527_v62 = vadd.f32 %v522_v21, %v514_v57 }
  0xe8   : > { %v502_v23 = vpop.permute.xlu0 %501  ;;  %v595_v52 = vadd.f32 %v590_v17, %v582_v42 }
  0xe9   : > { %v638_v36 = vpop.permute.xlu2 %637  ;;  %v506_v56 = vadd.f32 %v502_v23, %v493_v53 }
  0xeb   : > { %v515_v61 = vadd.f32 %v513_v48, %v506_v56 }
  0xef   : > { %v605_v28 = vpop.permute.xlu1 %604 }
  0xf0   : > { %v603_v44 = vpop.permute.xlu0 %602  ;;  %v609_v50 = vadd.f32 %v605_v28, %v596_v47 }
  0xf1   : > { %v559_v37 = vpop.permute.xlu2 %558  ;;  %v608_v54 = vadd.f32 %v603_v44, %v595_v52 }
  0xf2   : > { %v618_v0 = vadd.f32 %v616_v59, %v609_v50 }
  0xf3   : > { %v617_v60 = vadd.f32 %v615_v55, %v608_v54 }
  0xf4   : > { %v631_v2 = vadd.f32 %v627_v25, %v618_v0 }
  0xf7   : > { %v625_v30 = vpop.permute.xlu1 %624 }
  0xf8   : > { %v524_v33 = vpop.permute.xlu0 %523  ;;  %v630_v63 = vadd.f32 %v625_v30, %v617_v60 }
  0xf9   : > { %v570_v24 = vpop.permute.xlu2 %569  ;;  %v528_v12 = vadd.f32 %v524_v33, %v515_v61 }
  0xfa   : > { %v643_v10 = vadd.f32 %v638_v36, %v630_v63 }
  0xfc   : > { %v652_v17 = vadd.f32 %v650_v13, %v643_v10 }
  0xff   : > { %v537_v16 = vpop.permute.xlu1 %536 }
 0x100   : > { %v535_v43 = vpop.permute.xlu0 %534  ;;  %v541_v4 = vadd.f32 %v537_v16, %v528_v12 }
 0x101   : > { %v540_v3 = vadd.f32 %v535_v43, %v527_v62  ;;  %v675_v25 = vpop.permute.xlu2 %674 }
 0x102   : > { %v550_v40 = vadd.f32 %v548_v7, %v541_v4 }
 0x103   : > { %v549_v8 = vadd.f32 %v547_v5, %v540_v3 }
 0x104   : > { %v563_v29 = vadd.f32 %v559_v37, %v550_v40 }
 0x107   : > { %v557_v26 = vpop.permute.xlu1 %556 }
 0x108   : > { %v640_v58 = vpop.permute.xlu0 %639  ;;  %v562_v21 = vadd.f32 %v557_v26, %v549_v8 }
 0x109   : > { %v644_v6 = vadd.f32 %v640_v58, %v631_v2 }
 0x10a   : > { %v575_v44 = vadd.f32 %v570_v24, %v562_v21 }
 0x10b   : > { %v653_v19 = vadd.f32 %v651_v35, %v644_v6 }
 0x10f   : > { %v662_v9 = vpop.permute.xlu1 %661 }
 0x110   : > { %v660_v15 = vpop.permute.xlu0 %659  ;;  %v666_v22 = vadd.f32 %v662_v9, %v653_v19 }
 0x111   : > { %v665_v23 = vadd.f32 %v660_v15, %v652_v17 }
 0x112   : > { %v679_v33 = vadd.f32 %v675_v25, %v666_v22 }
 0x117   : > { %v673_v28 = vpop.permute.xlu1 %672 }
 0x118   : > { %v678_v32 = vadd.f32 %v673_v28, %v665_v23  ;;  %v572_v30 = vpop.permute.xlu0 %571 }
 0x119   : > { %v576_v36 = vadd.f32 %v572_v30, %v563_v29 }
 0x11a   : > { %v682_v34 = vadd.f32 %v678_v32, %v575_v44 }
 0x11b   : > { %v683_v11 = vadd.f32 %v679_v33, %v576_v36 }
 0x11c   : > { %v684_v39 = vadd.f32 %v682_v34, %v1383_v14 }
 0x11d   : > { %v685_v27 = vadd.f32 %v683_v11, %v1385_v18 }
 0x11e   : > { %v687_v16 = vadd.f32 %v686_v38, %v684_v39 }
 0x11f   : > { %v688_v41 = vadd.f32 %v686_v38, %v685_v27 }
 0x120   : > { %690 = vst.msk [vmem:[%s229_s26] sm:$0xff] %vm689_vm0, %v687_v16 }
 0x121   : > { %692 = vst.msk [vmem:[%s229_s26 + $0x8] sm:$0x3f] %vm691_vm1, %v688_v41 }
 0x122 PF: > { %s18_s19 = sadd.s32 1, %s1075_s19   ;;  %s1432_s14 = smov %s1059_s15 }
 0x123   : > { %p15_p2 = scmp.ge.s32.totalorder %s18_s19, 4   ;;  %s1433_s15 = smov %s1063_s16 }
 0x124   : > { %s1434_s16 = smov %s1180_s13  ;;  %s1435_s17 = smov %s1071_s18 }
 0x125   : > { %s1436_s18 = smov %s1438_s30  ;;  %17 = sbr.rel (!%p15_p2) target bundleno = 7 (0x7), region = 89 }
 0x12a   :  { %723 = vsyncpa [#allocation4], 1 }
 0x12b   :  { %725 = vsyncpa [#allocation4 + $0x1], 1 }
 0x12c   :  { %726 = vsyncpa [#allocation5], 1 }
 0x12d   :  { %728 = vsyncpa [#allocation5 + $0x1], 1 }

</bundles_post_ra>
